<compile_context>
chip_gen: v7x
topology: tpu7x:2x2x1
jax: 0.10.0
libtpu: 0.0.40
codegen_flags: <defaults>
</compile_context>

<pallas_src>
import functools

import jax
import jax.numpy as jnp
from jax import lax
from jax.experimental import pallas as pl
from jax.experimental.pallas import tpu as pltpu


def gat_kernel(h_ref, adj_ref, wall_ref, wb_ref, a1_ref, a2_ref, ab_ref,
               out_ref, attw_ref, *, alpha, num_heads, feat_dim, num_nodes,
               num_iters, batch_block):
    H, D, N, Bb = num_heads, feat_dim, num_nodes, batch_block

    w_all = wall_ref[...]            # (D, H*D)   fused per-head projection weights
    wb = wb_ref[...]                 # (1, H*D)   fused projection biases
    a1 = a1_ref[...]                 # (H*D, H)   block-diagonal a_1 weights
    a2 = a2_ref[...]                 # (H, H*D)   block-diagonal a_2 weights
    ab = ab_ref[...]                 # (1, H)     a_1.bias + a_2.bias per head

    cur = h_ref[...].reshape(Bb * N, D)            # all batch rows of this grid step

    for it in range(num_iters):                    # static unroll (tiny trip count)
        # Fused projection for all heads and all Bb batch elements: one MXU push.
        ht_all = jnp.dot(cur, w_all, preferred_element_type=jnp.float32) + wb   # (Bb*N, H*D)
        # All-head e1 / e2 via block-diagonal operands (2 pushes instead of 2*H).
        e1_all = jnp.dot(ht_all, a1, preferred_element_type=jnp.float32) + ab   # (Bb*N, H)
        e2_all = lax.dot_general(a2, ht_all, (((1,), (1,)), ((), ())),
                                 preferred_element_type=jnp.float32)            # (H, Bb*N)

        new_rows = []
        for bb in range(Bb):
            r0 = bb * N
            adj = adj_ref[bb]                      # (N, N)
            ht_b = ht_all[r0:r0 + N, :]            # (N, H*D)

            att_tiles = []                         # per-head (N, N) attention
            ht_tiles = []                          # per-head (N, D) projected feats
            for k in range(H):                     # tiny H -> fully unrolled
                e1 = e1_all[r0:r0 + N, k:k + 1]    # (N, 1), both biases folded in
                e2 = e2_all[k:k + 1, r0:r0 + N]    # (1, N), already lane-oriented
                att = e1 + e2                      # att[i, j] = e1[i] + e2[j]  (VPU)
                att = jnp.where(att >= 0.0, att, alpha * att)        # LeakyReLU(alpha)
                row_max = jnp.max(att, axis=1, keepdims=True)        # torch.max(att, 2)[0]
                att_exp = jnp.exp(att - row_max) * adj
                row_sum = jnp.sum(att_exp, axis=1, keepdims=True)
                row_sum = jnp.where(row_sum == 0.0, jnp.ones_like(row_sum), row_sum)
                att_tiles.append(att_exp / row_sum)                  # exact div (matches torch)
                ht_tiles.append(ht_b[:, k * D:(k + 1) * D])
                # TODO(synk): nn.Dropout(p=0.5) on att_values omitted (inference mode).

            att_cat = jnp.concatenate(att_tiles, axis=1)   # (N, H*N)  lane-dense
            ht_stack = jnp.concatenate(ht_tiles, axis=0)   # (H*N, D)
            if it == 0:
                attw_ref[bb] = att_cat                     # one wide store per batch elem

            # All H aggregations as a single (N, H*N) @ (H*N, D) push, then
            # mean over heads + residual + tanh.
            acc = jnp.dot(att_cat, ht_stack, preferred_element_type=jnp.float32)
            new_rows.append(jnp.tanh(cur[r0:r0 + N, :] + acc * (1.0 / H)))

        cur = new_rows[0] if Bb == 1 else jnp.concatenate(new_rows, axis=0)

    out_ref[...] = cur.reshape(Bb, N, D).astype(out_ref.dtype)


def _build_call(B, N, D, H, Bb, dtype, *, alpha, num_iters):
    kernel = functools.partial(gat_kernel, alpha=alpha, num_heads=H, feat_dim=D,
                               num_nodes=N, num_iters=num_iters, batch_block=Bb)
    out_shape = (jax.ShapeDtypeStruct((B, N, D), dtype),
                 jax.ShapeDtypeStruct((B, N, H * N), jnp.float32))
    return pl.pallas_call(
        kernel,
        out_shape=out_shape,
        grid_spec=pltpu.PrefetchScalarGridSpec(
            num_scalar_prefetch=0,
            grid=(B // Bb,),
            in_specs=[
                pl.BlockSpec((Bb, N, D), lambda b: (b, 0, 0)),       # node features
                pl.BlockSpec((Bb, N, N), lambda b: (b, 0, 0)),       # adjacency
                pl.BlockSpec((D, H * D), lambda b: (0, 0)),          # fused W
                pl.BlockSpec((1, H * D), lambda b: (0, 0)),          # fused W bias
                pl.BlockSpec((H * D, H), lambda b: (0, 0)),          # block-diag a1
                pl.BlockSpec((H, H * D), lambda b: (0, 0)),          # block-diag a2
                pl.BlockSpec((1, H), lambda b: (0, 0)),              # a1b + a2b row
            ],
            out_specs=(
                pl.BlockSpec((Bb, N, D), lambda b: (b, 0, 0)),       # updated nodes
                pl.BlockSpec((Bb, N, H * N), lambda b: (b, 0, 0)),   # lane-dense att weights
            )),
        compiler_params=pltpu.CompilerParams(
            dimension_semantics=("parallel",)),
    )


def gat_forward(h, adjacency, params, *, num_heads=4, alpha=0.2, num_gat_iters=1,
                batch_block=None):
    """h: (B, N, 1, D), adjacency: (B, N, N). Returns (out (B,N,1,D), att_w (B,H,N,N))."""
    B, N, _, D = h.shape
    H = num_heads
    W, Wb, a1w, a1b, a2w, a2b = params

    if batch_block is None:
        # Fold batch rows into the matmul sublanes, but keep >= 2 parallel grid
        # steps so both of v7x's TensorCores get work (v5e/v6e are indifferent).
        batch_block = max(1, B // 2)
    while B % batch_block:
        batch_block -= 1

    # Host-side operand packing (plain XLA, traced once, outside the kernel).
    W_all = jnp.transpose(W, (1, 0, 2)).reshape(D, H * D)   # W_all[d, k*D+e] = W[k, d, e]
    Wb_all = Wb.reshape(1, H * D)
    eye = jnp.eye(H, dtype=jnp.float32)
    A1 = (a1w[:, 0, :, None] * eye[:, None, :]).reshape(H * D, H)   # A1[k*D+d, k] = a1w[k,0,d]
    A2 = (eye[:, :, None] * a2w[None, :, 0, :]).reshape(H, H * D)   # A2[k, k*D+d] = a2w[k,0,d]
    ab = (a1b[:, 0, 0] + a2b[:, 0, 0]).reshape(1, H).astype(jnp.float32)

    call = _build_call(B, N, D, H, batch_block, h.dtype,
                       alpha=alpha, num_iters=num_gat_iters)
    out, attw_flat = call(h[:, :, 0, :], adjacency, W_all, Wb_all, A1, A2, ab)

    # Lane-dense (B, N, H*N) -> (B, H, N, N) to match the module's return layout.
    att_weights = attw_flat.reshape(B, N, H, N).transpose(0, 2, 1, 3)
    return out[:, :, None, :], att_weights


def gat_reference(h, adjacency, params, *, num_heads=4, alpha=0.2, num_gat_iters=1):
    """Plain-JAX reference matching the PyTorch forward (eval mode)."""
    W, Wb, a1w, a1b, a2w, a2b = params
    cur = h[:, :, 0, :]
    prec = lax.Precision.HIGHEST
    att_list = []
    for it in range(num_gat_iters):
        heads = []
        for k in range(num_heads):
            ht = jnp.einsum("bnd,de->bne", cur, W[k], precision=prec) + Wb[k, 0]
            e1 = jnp.einsum("bnd,d->bn", ht, a1w[k, 0], precision=prec) + a1b[k, 0, 0]
            e2 = jnp.einsum("bnd,d->bn", ht, a2w[k, 0], precision=prec) + a2b[k, 0, 0]
            att = e1[:, :, None] + e2[:, None, :]
            att = jnp.where(att >= 0.0, att, alpha * att)
            mx = jnp.max(att, axis=2, keepdims=True)
            ex = jnp.exp(att - mx) * adjacency
            sm = jnp.sum(ex, axis=2, keepdims=True)
            sm = jnp.where(sm == 0.0, jnp.ones_like(sm), sm)
            av = ex / sm
            if it == 0:
                att_list.append(av)
            heads.append(jnp.einsum("bij,bjd->bid", av, ht, precision=prec))
        cur = jnp.tanh(cur + jnp.mean(jnp.stack(heads, axis=-1), axis=-1))
    return cur[:, :, None, :], jnp.stack(att_list, axis=1)


def init_params(key, d, num_heads):
    ks = jax.random.split(key, 6)
    bound = 1.0 / (d ** 0.5)
    W = jax.random.uniform(ks[0], (num_heads, d, d), jnp.float32, -bound, bound)
    Wb = jax.random.uniform(ks[1], (num_heads, 1, d), jnp.float32, -bound, bound)
    a1w = jax.random.uniform(ks[2], (num_heads, 1, d), jnp.float32, -bound, bound)
    a1b = jax.random.uniform(ks[3], (num_heads, 1, 1), jnp.float32, -bound, bound)
    a2w = jax.random.uniform(ks[4], (num_heads, 1, d), jnp.float32, -bound, bound)
    a2b = jax.random.uniform(ks[5], (num_heads, 1, 1), jnp.float32, -bound, bound)
    return W, Wb, a1w, a1b, a2w, a2b


if __name__ == "__main__":
    B, N, D, H = 2, 16, 32, 4          # input_dim == output_dim == D (residual add)
    key = jax.random.PRNGKey(0)
    kh, ka, kp = jax.random.split(key, 3)

    h = jax.random.normal(kh, (B, N, 1, D), jnp.float32)
    adj = jax.random.bernoulli(ka, 0.4, (B, N, N)).astype(jnp.float32)
    adj = adj.at[:, 0, :].set(0.0)     # exercise the all-zero-row (mask_sum == 0) path
    params = init_params(kp, D, H)

    out, att_w = gat_forward(h, adj, params, num_heads=H, alpha=0.2, num_gat_iters=1)
    out = jax.block_until_ready(out)
    att_w = jax.block_until_ready(att_w)

    ref_out, ref_att = gat_reference(h, adj, params, num_heads=H, alpha=0.2, num_gat_iters=1)
    assert out.shape == (B, N, 1, D) and att_w.shape == (B, H, N, N)
    assert jnp.allclose(out, ref_out, atol=2e-3, rtol=2e-3)
    assert jnp.allclose(att_w, ref_att, atol=2e-3, rtol=2e-3)

    # In-kernel multi-iteration path (single pallas_call, no intermediate HBM traffic).
    out2, att_w2 = gat_forward(h, adj, params, num_heads=H, alpha=0.2, num_gat_iters=2)
    out2 = jax.block_until_ready(out2)
    ref_out2, ref_att2 = gat_reference(h, adj, params, num_heads=H, alpha=0.2, num_gat_iters=2)
    assert jnp.allclose(out2, ref_out2, atol=2e-3, rtol=2e-3)
    assert jnp.allclose(att_w2, ref_att2, atol=2e-3, rtol=2e-3)

    print("KERNEL_OK")
</pallas_src>

<mosaic_0001>
module attributes {stable_mosaic.version = 11 : i64} {
  func.func @gat_kernel(%arg0: i32, %arg1: memref<1x16x32xf32, #tpu.memory_space<vmem>>, %arg2: memref<1x16x16xf32, #tpu.memory_space<vmem>>, %arg3: memref<32x128xf32, #tpu.memory_space<vmem>>, %arg4: memref<1x128xf32, #tpu.memory_space<vmem>>, %arg5: memref<128x4xf32, #tpu.memory_space<vmem>>, %arg6: memref<4x128xf32, #tpu.memory_space<vmem>>, %arg7: memref<1x4xf32, #tpu.memory_space<vmem>>, %arg8: memref<1x16x32xf32, #tpu.memory_space<vmem>>, %arg9: memref<1x16x64xf32, #tpu.memory_space<vmem>>) attributes {dimension_semantics = [#tpu.dimension_semantics<parallel>], iteration_bounds = array<i64: 2>, scalar_prefetch = 0 : i64, scratch_operands = 0 : i64, tpu.core_type = #tpu.core_type<tc>, window_params = [{transform_indices = @transform_0, window_bounds = array<i64: 1, 16, 32>}, {transform_indices = @transform_1, window_bounds = array<i64: 1, 16, 16>}, {pipeline_mode = #tpu.pipeline_mode<synchronous>, transform_indices = @transform_2, window_bounds = array<i64: 32, 128>}, {pipeline_mode = #tpu.pipeline_mode<synchronous>, transform_indices = @transform_3, window_bounds = array<i64: 1, 128>}, {pipeline_mode = #tpu.pipeline_mode<synchronous>, transform_indices = @transform_4, window_bounds = array<i64: 128, 4>}, {pipeline_mode = #tpu.pipeline_mode<synchronous>, transform_indices = @transform_5, window_bounds = array<i64: 4, 128>}, {pipeline_mode = #tpu.pipeline_mode<synchronous>, transform_indices = @transform_6, window_bounds = array<i64: 1, 4>}, {transform_indices = @transform_7, window_bounds = array<i64: 1, 16, 32>}, {transform_indices = @transform_8, window_bounds = array<i64: 1, 16, 64>}]} {
    %c0 = arith.constant 0 : index
    %c0_0 = arith.constant 0 : index
    %0 = vector.load %arg3[%c0, %c0_0] : memref<32x128xf32, #tpu.memory_space<vmem>>, vector<32x128xf32>
    %c0_1 = arith.constant 0 : index
    %c0_2 = arith.constant 0 : index
    %1 = vector.load %arg4[%c0_1, %c0_2] : memref<1x128xf32, #tpu.memory_space<vmem>>, vector<1x128xf32>
    %c0_3 = arith.constant 0 : index
    %c0_4 = arith.constant 0 : index
    %2 = vector.load %arg5[%c0_3, %c0_4] : memref<128x4xf32, #tpu.memory_space<vmem>>, vector<128x4xf32>
    %c0_5 = arith.constant 0 : index
    %c0_6 = arith.constant 0 : index
    %3 = vector.load %arg6[%c0_5, %c0_6] : memref<4x128xf32, #tpu.memory_space<vmem>>, vector<4x128xf32>
    %c0_7 = arith.constant 0 : index
    %c0_8 = arith.constant 0 : index
    %4 = vector.load %arg7[%c0_7, %c0_8] : memref<1x4xf32, #tpu.memory_space<vmem>>, vector<1x4xf32>
    %c0_9 = arith.constant 0 : index
    %c0_10 = arith.constant 0 : index
    %c0_11 = arith.constant 0 : index
    %5 = vector.load %arg1[%c0_9, %c0_10, %c0_11] : memref<1x16x32xf32, #tpu.memory_space<vmem>>, vector<1x16x32xf32>
    %6 = vector.shape_cast %5 : vector<1x16x32xf32> to vector<16x32xf32>
    %cst = arith.constant dense<0.000000e+00> : vector<16x128xf32>
    %7 = tpu.matmul %6, %0, %cst {dimension_numbers = #tpu.dot_dimension_numbers<[1], [0], [0], [1], [0, 0, 1, 1], [], []>} : vector<16x32xf32>, vector<32x128xf32>, vector<16x128xf32> -> vector<16x128xf32>
    %8 = vector.broadcast %1 : vector<1x128xf32> to vector<16x128xf32>
    %9 = arith.addf %7, %8 : vector<16x128xf32>
    %cst_12 = arith.constant dense<0.000000e+00> : vector<16x4xf32>
    %10 = tpu.matmul %9, %2, %cst_12 {dimension_numbers = #tpu.dot_dimension_numbers<[1], [0], [0], [1], [0, 0, 1, 1], [], []>} : vector<16x128xf32>, vector<128x4xf32>, vector<16x4xf32> -> vector<16x4xf32>
    %11 = vector.broadcast %4 : vector<1x4xf32> to vector<16x4xf32>
    %12 = arith.addf %10, %11 : vector<16x4xf32>
    %cst_13 = arith.constant dense<0.000000e+00> : vector<4x16xf32>
    %13 = tpu.matmul %3, %9, %cst_13 {dimension_numbers = #tpu.dot_dimension_numbers<[1], [1], [0], [0], [0, 0, 1, 0], [], []>} : vector<4x128xf32>, vector<16x128xf32>, vector<4x16xf32> -> vector<4x16xf32>
    %c0_14 = arith.constant 0 : index
    %c0_15 = arith.constant 0 : index
    %c0_16 = arith.constant 0 : index
    %14 = vector.load %arg2[%c0_14, %c0_15, %c0_16] : memref<1x16x16xf32, #tpu.memory_space<vmem>>, vector<1x16x16xf32>
    %15 = vector.shape_cast %14 : vector<1x16x16xf32> to vector<16x16xf32>
    %16 = vector.extract_strided_slice %12 {offsets = [0, 0], sizes = [16, 1], strides = [1, 1]} : vector<16x4xf32> to vector<16x1xf32>
    %17 = vector.extract_strided_slice %13 {offsets = [0, 0], sizes = [1, 16], strides = [1, 1]} : vector<4x16xf32> to vector<1x16xf32>
    %18 = vector.broadcast %16 : vector<16x1xf32> to vector<16x16xf32>
    %19 = vector.broadcast %17 : vector<1x16xf32> to vector<16x16xf32>
    %20 = arith.addf %18, %19 : vector<16x16xf32>
    %cst_17 = arith.constant 0.000000e+00 : f32
    %21 = vector.broadcast %cst_17 : f32 to vector<16x16xf32>
    %22 = arith.cmpf oge, %20, %21 : vector<16x16xf32>
    %cst_18 = arith.constant 2.000000e-01 : f32
    %23 = vector.broadcast %cst_18 : f32 to vector<16x16xf32>
    %24 = arith.mulf %23, %20 : vector<16x16xf32>
    %25 = arith.select %22, %20, %24 : vector<16x16xi1>, vector<16x16xf32>
    %cst_19 = arith.constant dense<0xFF800000> : vector<16xf32>
    %26 = vector.multi_reduction <maximumf>, %25, %cst_19 [1] : vector<16x16xf32> to vector<16xf32>
    %27 = vector.shape_cast %26 : vector<16xf32> to vector<16x1xf32>
    %28 = vector.broadcast %27 : vector<16x1xf32> to vector<16x16xf32>
    %29 = arith.subf %25, %28 : vector<16x16xf32>
    %30 = math.exp %29 : vector<16x16xf32>
    %31 = arith.mulf %30, %15 : vector<16x16xf32>
    %cst_20 = arith.constant dense<0.000000e+00> : vector<16xf32>
    %32 = vector.multi_reduction <add>, %31, %cst_20 [1] : vector<16x16xf32> to vector<16xf32>
    %33 = vector.shape_cast %32 : vector<16xf32> to vector<16x1xf32>
    %cst_21 = arith.constant 0.000000e+00 : f32
    %34 = vector.broadcast %cst_21 : f32 to vector<16x1xf32>
    %35 = arith.cmpf oeq, %33, %34 : vector<16x1xf32>
    %cst_22 = arith.constant 1.000000e+00 : f32
    %36 = vector.broadcast %cst_22 : f32 to vector<16x1xf32>
    %37 = arith.select %35, %36, %33 : vector<16x1xi1>, vector<16x1xf32>
    %38 = vector.broadcast %37 : vector<16x1xf32> to vector<16x16xf32>
    %39 = arith.divf %31, %38 : vector<16x16xf32>
    %40 = vector.extract_strided_slice %9 {offsets = [0, 0], sizes = [16, 32], strides = [1, 1]} : vector<16x128xf32> to vector<16x32xf32>
    %41 = vector.extract_strided_slice %12 {offsets = [0, 1], sizes = [16, 1], strides = [1, 1]} : vector<16x4xf32> to vector<16x1xf32>
    %42 = vector.extract_strided_slice %13 {offsets = [1, 0], sizes = [1, 16], strides = [1, 1]} : vector<4x16xf32> to vector<1x16xf32>
    %43 = vector.broadcast %41 : vector<16x1xf32> to vector<16x16xf32>
    %44 = vector.broadcast %42 : vector<1x16xf32> to vector<16x16xf32>
    %45 = arith.addf %43, %44 : vector<16x16xf32>
    %cst_23 = arith.constant 0.000000e+00 : f32
    %46 = vector.broadcast %cst_23 : f32 to vector<16x16xf32>
    %47 = arith.cmpf oge, %45, %46 : vector<16x16xf32>
    %cst_24 = arith.constant 2.000000e-01 : f32
    %48 = vector.broadcast %cst_24 : f32 to vector<16x16xf32>
    %49 = arith.mulf %48, %45 : vector<16x16xf32>
    %50 = arith.select %47, %45, %49 : vector<16x16xi1>, vector<16x16xf32>
    %cst_25 = arith.constant dense<0xFF800000> : vector<16xf32>
    %51 = vector.multi_reduction <maximumf>, %50, %cst_25 [1] : vector<16x16xf32> to vector<16xf32>
    %52 = vector.shape_cast %51 : vector<16xf32> to vector<16x1xf32>
    %53 = vector.broadcast %52 : vector<16x1xf32> to vector<16x16xf32>
    %54 = arith.subf %50, %53 : vector<16x16xf32>
    %55 = math.exp %54 : vector<16x16xf32>
    %56 = arith.mulf %55, %15 : vector<16x16xf32>
    %cst_26 = arith.constant dense<0.000000e+00> : vector<16xf32>
    %57 = vector.multi_reduction <add>, %56, %cst_26 [1] : vector<16x16xf32> to vector<16xf32>
    %58 = vector.shape_cast %57 : vector<16xf32> to vector<16x1xf32>
    %cst_27 = arith.constant 0.000000e+00 : f32
    %59 = vector.broadcast %cst_27 : f32 to vector<16x1xf32>
    %60 = arith.cmpf oeq, %58, %59 : vector<16x1xf32>
    %cst_28 = arith.constant 1.000000e+00 : f32
    %61 = vector.broadcast %cst_28 : f32 to vector<16x1xf32>
    %62 = arith.select %60, %61, %58 : vector<16x1xi1>, vector<16x1xf32>
    %63 = vector.broadcast %62 : vector<16x1xf32> to vector<16x16xf32>
    %64 = arith.divf %56, %63 : vector<16x16xf32>
    %65 = vector.extract_strided_slice %9 {offsets = [0, 32], sizes = [16, 32], strides = [1, 1]} : vector<16x128xf32> to vector<16x32xf32>
    %66 = vector.extract_strided_slice %12 {offsets = [0, 2], sizes = [16, 1], strides = [1, 1]} : vector<16x4xf32> to vector<16x1xf32>
    %67 = vector.extract_strided_slice %13 {offsets = [2, 0], sizes = [1, 16], strides = [1, 1]} : vector<4x16xf32> to vector<1x16xf32>
    %68 = vector.broadcast %66 : vector<16x1xf32> to vector<16x16xf32>
    %69 = vector.broadcast %67 : vector<1x16xf32> to vector<16x16xf32>
    %70 = arith.addf %68, %69 : vector<16x16xf32>
    %cst_29 = arith.constant 0.000000e+00 : f32
    %71 = vector.broadcast %cst_29 : f32 to vector<16x16xf32>
    %72 = arith.cmpf oge, %70, %71 : vector<16x16xf32>
    %cst_30 = arith.constant 2.000000e-01 : f32
    %73 = vector.broadcast %cst_30 : f32 to vector<16x16xf32>
    %74 = arith.mulf %73, %70 : vector<16x16xf32>
    %75 = arith.select %72, %70, %74 : vector<16x16xi1>, vector<16x16xf32>
    %cst_31 = arith.constant dense<0xFF800000> : vector<16xf32>
    %76 = vector.multi_reduction <maximumf>, %75, %cst_31 [1] : vector<16x16xf32> to vector<16xf32>
    %77 = vector.shape_cast %76 : vector<16xf32> to vector<16x1xf32>
    %78 = vector.broadcast %77 : vector<16x1xf32> to vector<16x16xf32>
    %79 = arith.subf %75, %78 : vector<16x16xf32>
    %80 = math.exp %79 : vector<16x16xf32>
    %81 = arith.mulf %80, %15 : vector<16x16xf32>
    %cst_32 = arith.constant dense<0.000000e+00> : vector<16xf32>
    %82 = vector.multi_reduction <add>, %81, %cst_32 [1] : vector<16x16xf32> to vector<16xf32>
    %83 = vector.shape_cast %82 : vector<16xf32> to vector<16x1xf32>
    %cst_33 = arith.constant 0.000000e+00 : f32
    %84 = vector.broadcast %cst_33 : f32 to vector<16x1xf32>
    %85 = arith.cmpf oeq, %83, %84 : vector<16x1xf32>
    %cst_34 = arith.constant 1.000000e+00 : f32
    %86 = vector.broadcast %cst_34 : f32 to vector<16x1xf32>
    %87 = arith.select %85, %86, %83 : vector<16x1xi1>, vector<16x1xf32>
    %88 = vector.broadcast %87 : vector<16x1xf32> to vector<16x16xf32>
    %89 = arith.divf %81, %88 : vector<16x16xf32>
    %90 = vector.extract_strided_slice %9 {offsets = [0, 64], sizes = [16, 32], strides = [1, 1]} : vector<16x128xf32> to vector<16x32xf32>
    %91 = vector.extract_strided_slice %12 {offsets = [0, 3], sizes = [16, 1], strides = [1, 1]} : vector<16x4xf32> to vector<16x1xf32>
    %92 = vector.extract_strided_slice %13 {offsets = [3, 0], sizes = [1, 16], strides = [1, 1]} : vector<4x16xf32> to vector<1x16xf32>
    %93 = vector.broadcast %91 : vector<16x1xf32> to vector<16x16xf32>
    %94 = vector.broadcast %92 : vector<1x16xf32> to vector<16x16xf32>
    %95 = arith.addf %93, %94 : vector<16x16xf32>
    %cst_35 = arith.constant 0.000000e+00 : f32
    %96 = vector.broadcast %cst_35 : f32 to vector<16x16xf32>
    %97 = arith.cmpf oge, %95, %96 : vector<16x16xf32>
    %cst_36 = arith.constant 2.000000e-01 : f32
    %98 = vector.broadcast %cst_36 : f32 to vector<16x16xf32>
    %99 = arith.mulf %98, %95 : vector<16x16xf32>
    %100 = arith.select %97, %95, %99 : vector<16x16xi1>, vector<16x16xf32>
    %cst_37 = arith.constant dense<0xFF800000> : vector<16xf32>
    %101 = vector.multi_reduction <maximumf>, %100, %cst_37 [1] : vector<16x16xf32> to vector<16xf32>
    %102 = vector.shape_cast %101 : vector<16xf32> to vector<16x1xf32>
    %103 = vector.broadcast %102 : vector<16x1xf32> to vector<16x16xf32>
    %104 = arith.subf %100, %103 : vector<16x16xf32>
    %105 = math.exp %104 : vector<16x16xf32>
    %106 = arith.mulf %105, %15 : vector<16x16xf32>
    %cst_38 = arith.constant dense<0.000000e+00> : vector<16xf32>
    %107 = vector.multi_reduction <add>, %106, %cst_38 [1] : vector<16x16xf32> to vector<16xf32>
    %108 = vector.shape_cast %107 : vector<16xf32> to vector<16x1xf32>
    %cst_39 = arith.constant 0.000000e+00 : f32
    %109 = vector.broadcast %cst_39 : f32 to vector<16x1xf32>
    %110 = arith.cmpf oeq, %108, %109 : vector<16x1xf32>
    %cst_40 = arith.constant 1.000000e+00 : f32
    %111 = vector.broadcast %cst_40 : f32 to vector<16x1xf32>
    %112 = arith.select %110, %111, %108 : vector<16x1xi1>, vector<16x1xf32>
    %113 = vector.broadcast %112 : vector<16x1xf32> to vector<16x16xf32>
    %114 = arith.divf %106, %113 : vector<16x16xf32>
    %115 = vector.extract_strided_slice %9 {offsets = [0, 96], sizes = [16, 32], strides = [1, 1]} : vector<16x128xf32> to vector<16x32xf32>
    %116 = tpu.concatenate %39, %64, %89, %114 in 1 : vector<16x16xf32>, vector<16x16xf32>, vector<16x16xf32>, vector<16x16xf32> -> vector<16x64xf32>
    %117 = tpu.concatenate %40, %65, %90, %115 in 0 : vector<16x32xf32>, vector<16x32xf32>, vector<16x32xf32>, vector<16x32xf32> -> vector<64x32xf32>
    %c0_41 = arith.constant 0 : index
    %c0_42 = arith.constant 0 : index
    %c0_43 = arith.constant 0 : index
    %118 = vector.load %arg9[%c0_41, %c0_42, %c0_43] : memref<1x16x64xf32, #tpu.memory_space<vmem>>, vector<1x16x64xf32>
    %119 = vector.shape_cast %118 : vector<1x16x64xf32> to vector<16x64xf32>
    %120 = vector.shape_cast %116 : vector<16x64xf32> to vector<1x16x64xf32>
    tpu.vector_store %arg9[%c0_41, %c0_42, %c0_43], %120 {strides = array<i32>} : memref<1x16x64xf32, #tpu.memory_space<vmem>>, vector<1x16x64xf32>,
    %cst_44 = arith.constant dense<0.000000e+00> : vector<16x32xf32>
    %121 = tpu.matmul %116, %117, %cst_44 {dimension_numbers = #tpu.dot_dimension_numbers<[1], [0], [0], [1], [0, 0, 1, 1], [], []>} : vector<16x64xf32>, vector<64x32xf32>, vector<16x32xf32> -> vector<16x32xf32>
    %cst_45 = arith.constant 2.500000e-01 : f32
    %122 = vector.broadcast %cst_45 : f32 to vector<16x32xf32>
    %123 = arith.mulf %121, %122 : vector<16x32xf32>
    %124 = arith.addf %6, %123 : vector<16x32xf32>
    %125 = math.tanh %124 : vector<16x32xf32>
    %126 = vector.shape_cast %125 : vector<16x32xf32> to vector<1x16x32xf32>
    %c0_46 = arith.constant 0 : index
    %c0_47 = arith.constant 0 : index
    %c0_48 = arith.constant 0 : index
    %127 = vector.load %arg8[%c0_46, %c0_47, %c0_48] : memref<1x16x32xf32, #tpu.memory_space<vmem>>, vector<1x16x32xf32>
    tpu.vector_store %arg8[%c0_46, %c0_47, %c0_48], %126 {strides = array<i32>} : memref<1x16x32xf32, #tpu.memory_space<vmem>>, vector<1x16x32xf32>,
    return
  }
  func.func @transform_0(%arg0: i32) -> (i32, i32, i32) {
    %c0_i32 = arith.constant 0 : i32
    %c0_i32_0 = arith.constant 0 : i32
    %c0_i32_1 = arith.constant 0 : i32
    return %arg0, %c0_i32, %c0_i32_0 : i32, i32, i32
  }
  func.func @transform_1(%arg0: i32) -> (i32, i32, i32) {
    %c0_i32 = arith.constant 0 : i32
    %c0_i32_0 = arith.constant 0 : i32
    %c0_i32_1 = arith.constant 0 : i32
    return %arg0, %c0_i32, %c0_i32_0 : i32, i32, i32
  }
  func.func @transform_2(%arg0: i32) -> (i32, i32) {
    %c0_i32 = arith.constant 0 : i32
    %c0_i32_0 = arith.constant 0 : i32
    %c0_i32_1 = arith.constant 0 : i32
    return %c0_i32, %c0_i32_0 : i32, i32
  }
  func.func @transform_3(%arg0: i32) -> (i32, i32) {
    %c0_i32 = arith.constant 0 : i32
    %c0_i32_0 = arith.constant 0 : i32
    %c0_i32_1 = arith.constant 0 : i32
    return %c0_i32, %c0_i32_0 : i32, i32
  }
  func.func @transform_4(%arg0: i32) -> (i32, i32) {
    %c0_i32 = arith.constant 0 : i32
    %c0_i32_0 = arith.constant 0 : i32
    %c0_i32_1 = arith.constant 0 : i32
    return %c0_i32, %c0_i32_0 : i32, i32
  }
  func.func @transform_5(%arg0: i32) -> (i32, i32) {
    %c0_i32 = arith.constant 0 : i32
    %c0_i32_0 = arith.constant 0 : i32
    %c0_i32_1 = arith.constant 0 : i32
    return %c0_i32, %c0_i32_0 : i32, i32
  }
  func.func @transform_6(%arg0: i32) -> (i32, i32) {
    %c0_i32 = arith.constant 0 : i32
    %c0_i32_0 = arith.constant 0 : i32
    %c0_i32_1 = arith.constant 0 : i32
    return %c0_i32, %c0_i32_0 : i32, i32
  }
  func.func @transform_7(%arg0: i32) -> (i32, i32, i32) {
    %c0_i32 = arith.constant 0 : i32
    %c0_i32_0 = arith.constant 0 : i32
    %c0_i32_1 = arith.constant 0 : i32
    return %arg0, %c0_i32, %c0_i32_0 : i32, i32, i32
  }
  func.func @transform_8(%arg0: i32) -> (i32, i32, i32) {
    %c0_i32 = arith.constant 0 : i32
    %c0_i32_0 = arith.constant 0 : i32
    %c0_i32_1 = arith.constant 0 : i32
    return %arg0, %c0_i32, %c0_i32_0 : i32, i32, i32
  }
}

</mosaic_0001>

<bundles_post_ra>
// kernel: tpu_custom_call.1
= control target key start
LH: loop header
LB: loop body
LE: loop exit
PB: predicated region body
PF: predicated region fallthrough
CT: control target
= control target key end

     0   :  { %14 = vsyncpa [#allocation3], 0  ;;  %s1859_s0 = inlined_call_operand.vmem [shape: f32[2,16,32], index: 0, kind: input, shape index: {}]   ;;  %s1860_s1 = inlined_call_operand.vmem [shape: f32[2,16,16], index: 1, kind: input, shape index: {}]   ;;  %s1861_s2 = inlined_call_operand.vmem [shape: f32[32,128], index: 2, kind: input, shape index: {}]   ;;  %s1862_s3 = inlined_call_operand.vmem [shape: f32[1,128], index: 3, kind: input, shape index: {}]   ;;  %s1863_s4 = inlined_call_operand.vmem [shape: f32[128,4], index: 4, kind: input, shape index: {}]   ;;  %s1864_s5 = inlined_call_operand.vmem [shape: f32[4,128], index: 5, kind: input, shape index: {}]   ;;  %s1865_s6 = inlined_call_operand.vmem [shape: f32[1,4], index: 6, kind: input, shape index: {}]   ;;  %s1866_s7 = inlined_call_operand.hbm [shape: f32[2,16,32], index: 7, kind: output, shape index: {0}]   ;;  %s1867_s8 = inlined_call_operand.hbm [shape: f32[2,16,64], index: 8, kind: output, shape index: {1}]  }
   0x1   :  { %16 = vsyncpa [#allocation3 + $0x1], 0 }
   0x2   :  { %17 = vsyncpa [#allocation5], 0 }
   0x3   :  { %19 = vsyncpa [#allocation5 + $0x1], 0  ;;  %s1549_s27 = smov 0   ;;  %s1551_s28 = smov 0  }
   0x4   :  { %s1553_s29 = smov 0   ;;  %s1555_s30 = smov 0  }
   0x5 LB: > { %s1570_s9 = sadd.s32 4294967295, %s1486_s30   ;;  %s1080_s10 = sadd.s32 4294967294, %s1486_s30   ;;  %s1486_s30 = sphi %s1555_s30, %s1875_s30   ;;  %s1482_s29 = sphi %s1553_s29, %s1874_s29   ;;  %s1478_s28 = sphi %s1551_s28, %s1873_s28   ;;  %s1474_s27 = sphi %s1549_s27, %s1872_s27  }
   0x6   : > { %s1574_s11 = sadd.s32 1, %s1486_s30   ;;  %s189_s12 = sadd.s32 1, %s1482_s29 }
   0x7   : > { %s186_s13 = ssub.s32 %s1486_s30, %s1574_s11  ;;  %p199_p0 = scmp.ne.s32.totalorder %s1482_s29, %s1478_s28 }
   0x8   : > { %p187_p1 = scmp.eq.s32.totalorder %s186_s13, 0  ;;  %p200_p2 = scmp.eq.s32.totalorder %s1570_s9, 1 }
   0x9   : > { %p205_p3 = scmp.ne.s32.totalorder %s1478_s28, %s1474_s27  ;;  %p206_p4 = scmp.eq.s32.totalorder %s1080_s10, 1 }
   0xa   : > { %s1585_s14 = scalar_select %p187_p1, %s1482_s29, %s189_s12  }
   0xb   : > { %p1587_p5 = por %p200_p2, %p199_p0  ;;  %p1591_p6 = por %p206_p4, %p205_p3 }
   0xc   : > { %p1083_p7 = scmp.ge.s32.totalorder %s1486_s30, 1  ;;  %p281_p8 = scmp.lt.s32.totalorder %s1486_s30, 3 }
   0xe   : > { %p282_p9 = pnand %p1083_p7, %p281_p8 }
   0xf   : > { %v335_v0 = vld [vmem:[%s1861_s2] sm:$0xff] (!%p282_p9)  ;;  %v336_v1 = vld [vmem:[%s1861_s2 + $0x8] sm:$0xff] (!%p282_p9)  ;;  %v337_v2 = vld [vmem:[%s1861_s2 + $0x10] sm:$0xff] (!%p282_p9)  ;;  %p325_p10 = scmp.lt.s32.totalorder (!%p282_p9), %s1570_s9, 1  ;;  %vm366_vm0 = vcmask (!%p282_p9), 261120   ;;  %v1488_v32 = vmov (!%p282_p9), 0.0|0.0   ;;  %v611_v53 = vlaneseq (!%p282_p9) }
  0x10   : > { %285 = sbr.rel (%p282_p9) target bundleno = 1281 (0x501), region = 48  ;;  %v1217_v3 = vpack.c.bf16 (!%p282_p9), %v336_v1, %v335_v0  ;;  %v338_v4 = vld [vmem:[%s1861_s2 + $0x18] sm:$0xff] (!%p282_p9)  ;;  %v340_v5 = vld [vmem:[%s1863_s4] sm:$0xff] (!%p282_p9)  ;;  %v341_v6 = vld [vmem:[%s1863_s4 + $0x8] sm:$0xff] (!%p282_p9)  ;;  %vm1489_vm1 = vmmov (!%p282_p9), 0   ;;  %v1490_v33 = vmov (!%p282_p9), 0.0  }
  0x11   : > { %v1221_v7 = vpack.c.bf16 (!%p282_p9), %v338_v4, %v337_v2  ;;  %v1225_v8 = vpack.c.bf16 (!%p282_p9), %v341_v6, %v340_v5  ;;  %v342_v9 = vld [vmem:[%s1863_s4 + $0x10] sm:$0xff] (!%p282_p9)  ;;  %v343_v10 = vld [vmem:[%s1863_s4 + $0x18] sm:$0xff] (!%p282_p9)  ;;  %v344_v12 = vld [vmem:[%s1863_s4 + $0x20] sm:$0xff] (!%p282_p9)  ;;  %v1491_v42 = vmov (!%p282_p9), 2   ;;  %v1492_v43 = vmov (!%p282_p9), 1   ;;  %s1495_s21 = smov (!%p282_p9), 96  }
  0x12   : > { %1218 = vmatprep.subr.bf16.mxu0 (!%p282_p9), %v1217_v3  ;;  %v1229_v11 = vpack.c.bf16 (!%p282_p9), %v343_v10, %v342_v9  ;;  %v345_v13 = vld [vmem:[%s1863_s4 + $0x28] sm:$0xff] (!%p282_p9)  ;;  %v346_v16 = vld [vmem:[%s1863_s4 + $0x30] sm:$0xff] (!%p282_p9)  ;;  %v347_v17 = vld [vmem:[%s1863_s4 + $0x38] sm:$0xff] (!%p282_p9)  ;;  %1335 = vset.pattern.permute.xlu1 (!%p282_p9), %v1491_v42  ;;  %v1493_v51 = vmov (!%p282_p9), 3   ;;  %v1494_v52 = vmov (!%p282_p9), 0   ;;  %v612_v54 = vshrl.u32 (!%p282_p9), %v611_v53, 7 }
  0x13   : > { %1220 = vmatpush3.bf16.msra.mxu0 (!%p282_p9), %v1217_v3  ;;  %1226 = vmatprep.subr.bf16.mxu1 (!%p282_p9), %v1225_v8  ;;  %v1233_v15 = vpack.c.bf16 (!%p282_p9), %v345_v13, %v344_v12  ;;  %v1237_v19 = vpack.c.bf16 (!%p282_p9), %v347_v17, %v346_v16  ;;  %v348_v20 = vld [vmem:[%s1863_s4 + $0x40] sm:$0xff] (!%p282_p9)  ;;  %v349_v21 = vld [vmem:[%s1863_s4 + $0x48] sm:$0xff] (!%p282_p9)  ;;  %v350_v23 = vld [vmem:[%s1863_s4 + $0x50] sm:$0xff] (!%p282_p9)  ;;  %vm623_vm2 = vcmask (!%p282_p9), 130048   ;;  %s1498_s26 = smov (!%p282_p9), 16   ;;  %s1499_s10 = smov (!%p282_p9), 48  }
  0x14   : > { %1222 = vmatprep.subr.bf16.mxu0 (!%p282_p9), %v1221_v7  ;;  %1228 = vmatpush3.bf16.msra.mxu1 (!%p282_p9), %v1225_v8  ;;  %v1241_v22 = vpack.c.bf16 (!%p282_p9), %v349_v21, %v348_v20  ;;  %v351_v24 = vld [vmem:[%s1863_s4 + $0x58] sm:$0xff] (!%p282_p9)  ;;  %v352_v26 = vld [vmem:[%s1863_s4 + $0x60] sm:$0xff] (!%p282_p9)  ;;  %v353_v27 = vld [vmem:[%s1863_s4 + $0x68] sm:$0xff] (!%p282_p9)  ;;  %v710_v55 = vsub.s32 (!%p282_p9), 2, %v612_v54  ;;  %v662_v56 = vsub.s32 (!%p282_p9), 1, %v612_v54  ;;  %v758_v3 = vsub.s32 (!%p282_p9), 3, %v612_v54 }
  0x15   : > { %1230 = vmatprep.subr.bf16.mxu1 (!%p282_p9), %v1229_v11  ;;  %v1245_v25 = vpack.c.bf16 (!%p282_p9), %v351_v24, %v350_v23  ;;  %v1249_v28 = vpack.c.bf16 (!%p282_p9), %v353_v27, %v352_v26  ;;  %v354_v29 = vld [vmem:[%s1863_s4 + $0x70] sm:$0xff] (!%p282_p9)  ;;  %v355_v30 = vld [vmem:[%s1863_s4 + $0x78] sm:$0xff] (!%p282_p9)  ;;  %v1090_v34 = vld [vmem:[%s1862_s3] ss:$0 sm:$0xff] (!%p282_p9)  ;;  %1334 = vset.pattern.permute.xlu0 (!%p282_p9), %v1492_v43  ;;  %v613_v16 = vsub.s32 (!%p282_p9), 0, %v612_v54  ;;  %s1868_s19 = sshll.u32 (!%p282_p9), %s1570_s9, 8 }
  0x16   : > { %v1253_v31 = vpack.c.bf16 (!%p282_p9), %v355_v30, %v354_v29  ;;  %v356_v41 = vld [vmem:[%s1864_s5] sm:$0xf] (!%p282_p9)  ;;  %s1769_s22 = scalar_lea.hbm (!%p282_p9), %s1867_s8, %s1868_s19 }
  0x17   : > { %s1617_s13 = scalar_select %p325_p10, %s1570_s9, 1  ;;  %1224 = vmatpush3.bf16.msra.mxu0 %v1221_v7  ;;  %v1093_v44 = vld [vmem:[%s1865_s6] ss:$0 sm:$0xff] }
  0x18   : > { %1232 = vmatpush3.bf16.msra.mxu1 %v1229_v11  ;;  %1257 = vmatprep.subr.bf16.mxu0 %v1488_v32 }
  0x19   : > { %s1104_s25 = sshll.u32 %s1617_s13, 4  ;;  %1234 = vmatprep.subr.bf16.mxu1 %v1233_v15  ;;  %s1496_s13 = smov 32  }
  0x1a   : > { %s329_s12 = scalar_lea.vmem %s1859_s0, %s1104_s25  ;;  %s334_s24 = scalar_lea.vmem %s1860_s1, %s1104_s25 }
  0x1b   : > { %v1637_v14 = vld [vmem:[%s329_s12] sm:$0xff]  ;;  %v1647_v18 = vld [vmem:[%s329_s12 + $0x8] sm:$0xff]  ;;  %s1497_s25 = smov 64   ;;  %s1752_s12 = sand.u32 1, %s1478_s28  }
  0x1c   : > { %1153 = vmatprep.mubr.msk.f32.mxu0 %vm366_vm0, %v1637_v14  ;;  %1236 = vmatpush3.bf16.msra.mxu1 %v1233_v15  ;;  %s1084_s17 = sshll.u32 %s1752_s12, 4 }
  0x1d   : > { %1154 = vmatmul.mubr.msk.f32.vlgmr.msra.gmra.mrb[0].mxu0 %vm366_vm0, %v1647_v18  ;;  %1238 = vmatprep.subr.bf16.mxu1 %v1237_v19  ;;  %s324_s18 = scalar_lea.vmem [#allocation4], %s1084_s17 }
  0x1e   : > { %1195 = vmatprep.mubr.msk.f32.mxu0 %vm1489_vm1, %v1490_v33  ;;  %s974_s23 = sshll.u32 %s324_s18, 4  ;;  %s1771_s23 = int_to_ptr.vmem [resolvable:$true] %s974_s23 }
  0x20   : > { %1240 = vmatpush3.bf16.msra.mxu1 %v1237_v19 }
  0x21   : > { %1242 = vmatprep.subr.bf16.mxu1 %v1241_v22 }
  0x24   : > { %1244 = vmatpush3.bf16.msra.mxu1 %v1241_v22 }
  0x25   : > { %1246 = vmatprep.subr.bf16.mxu1 %v1245_v25 }
  0x28   : > { %1248 = vmatpush3.bf16.msra.mxu1 %v1245_v25 }
  0x29   : > { %1250 = vmatprep.subr.bf16.mxu1 %v1249_v28 }
  0x2c   : > { %1252 = vmatpush3.bf16.msra.mxu1 %v1249_v28 }
  0x2d   : > { %1254 = vmatprep.subr.bf16.mxu1 %v1253_v31 }
  0x30   : > { %1256 = vmatpush3.bf16.msra.mxu1 %v1253_v31 }
  0xf0   : > { %v1155_v35 = vpop.f32.mrb[0].mxu0 }
  0xf1   : > { %v445_v36 = vadd.f32 %v1155_v35, %v1090_v34  ;;  %v439_v37 = vpop.f32.mrb[1].mxu0 }
  0xf2   : > { %v440_v38 = vadd.f32 %v1090_v34, %v439_v37 }
  0xf4   : > { %1188 = vmatprep.mubr.f32.mxu1 %v440_v38  ;;  %v1258_v39 = vpack.c.bf16 %v445_v36, %v440_v38  ;;  %v1678_v40 = vpack.i.bf16 %v445_v36, %v440_v38 }
  0xf5   : > { %1189 = vmatmul.mubr.f32.vlgmr.msra.gmra.mrb[0].mxu1 %v445_v36 }
  0xf6   : > { %1259 = vmatpush3.bf16.xpose.msra.mxu0 %v1258_v39 }
  0xf7   : > { %1261 = vmatprep.subr.bf16.mxu0 %v1258_v39 }
  0xfd   : > { %1196 = vmatmul.mubr.f32.vlgmr.msra.gmra.mrb[2].mxu0 %v356_v41 }
  0xfe   : > { %1263 = vmatpush3.bf16.msra.mxu0 %v1258_v39 }
 0x1c8   : > { %v1190_v45 = vpop.f32.mrb[0].mxu1 }
 0x1c9   : > { %v526_v46 = vadd.f32 %v1190_v45, %v1093_v44  ;;  %v520_v47 = vpop.f32.mrb[1].mxu1 }
 0x1ca   : > { %v521_v48 = vadd.f32 %v1093_v44, %v520_v47 }
 0x1cb   : > { %705 = vperm.xlu1 %1335, %v526_v46   ;;  %657 = vperm.xlu0 %1334, %v526_v46  }
 0x1cf   : > { %701 = vperm.xlu1 %1335, %v521_v48   ;;  %653 = vperm.xlu0 %1334, %v521_v48  }
 0x1d0   : > { %v595_v49 = vpop.f32.mrb[2].mxu0 }
 0x1d1   : > { %v1197_v50 = vpop.f32.mrb[3].mxu0  ;;  %v711_v57 = vrot.slane %v595_v49, %v710_v55  ;;  %v663_v58 = vrot.slane %v595_v49, %v662_v56  ;;  %v759_v11 = vrot.slane %v595_v49, %v758_v3  ;;  %v614_v25 = vrot.slane %v595_v49, %v613_v16 }
 0x1d3   : > { %1337 = vset.pattern.permute.xlu1 %v1493_v51  ;;  %1336 = vset.pattern.permute.xlu0 %v1493_v51 }
 0x1d4   : > { %753 = vperm.xlu1 %1337, %v526_v46   ;;  %749 = vperm.xlu0 %1336, %v521_v48  }
 0x1d8   : > { %1339 = vset.pattern.permute.xlu1 %v1494_v52  ;;  %1338 = vset.pattern.permute.xlu0 %v1494_v52 }
 0x1d9   : > { %603 = vperm.xlu1 %1339, %v521_v48   ;;  %608 = vperm.xlu0 %1338, %v526_v46  }
 0x1dd   : > { %1355 = vset.pattern.permute.xlu0 %v1493_v51 }
 0x24a   : > { %v706_v59 = vpop.permute.xlu1 %705  ;;  %v658_v60 = vpop.permute.xlu0 %657 }
 0x24b   : > { %v713_v61 = vadd.f32 %v711_v57, %v706_v59  ;;  %v665_v62 = vadd.f32 %v663_v58, %v658_v60 }
 0x24d   : > { %v717_v63 = vmul.f32 0.2, %v713_v61  ;;  %v669_v0 = vmul.f32 0.2, %v665_v62  ;;  %vm667_vm3 = vcmp.ge.f32.partialorder %v665_v62, 0.0  ;;  %vm715_vm4 = vcmp.ge.f32.partialorder %v713_v61, 0.0 }
 0x24e   : > { %v702_v1 = vpop.permute.xlu1 %701  ;;  %v654_v2 = vpop.permute.xlu0 %653 }
 0x24f   : > { %v712_v4 = vadd.f32 %v711_v57, %v702_v1  ;;  %v664_v5 = vadd.f32 %v663_v58, %v654_v2  ;;  %v671_v6 = vsel %vm667_vm3, %v665_v62, %v669_v0  ;;  %v719_v10 = vsel %vm715_vm4, %v713_v61, %v717_v63  ;;  %v600_v58 = vld [vmem:[%s334_s24 + $0x8] sm:$0xff]  ;;  %v599_v0 = vld [vmem:[%s334_s24] sm:$0xff]  ;;  %s945_s24 = scalar_lea.sflag [#allocation5], %s1752_s12 }
 0x250   : > { %v675_v7 = vsel %vm623_vm2, %v671_v6, -inf  ;;  %v723_v20 = vsel %vm623_vm2, %v719_v10, -inf }
 0x251   : > { %v716_v8 = vmul.f32 0.2, %v712_v4  ;;  %v668_v9 = vmul.f32 0.2, %v664_v5  ;;  %676 = vmax.xlane.f32.xlu0 %v675_v7  ;;  %vm666_vm5 = vcmp.ge.f32.partialorder %v664_v5, 0.0  ;;  %vm714_vm6 = vcmp.ge.f32.partialorder %v712_v4, 0.0 }
 0x253   : > { %v754_v12 = vpop.permute.xlu1 %753  ;;  %v750_v13 = vpop.permute.xlu0 %749  ;;  %v670_v15 = vsel %vm666_vm5, %v664_v5, %v668_v9  ;;  %v718_v22 = vsel %vm714_vm6, %v712_v4, %v716_v8  ;;  %vm824_vm5 = vcmask 392192   ;;  %vm847_vm6 = vcmask 523264  }
 0x254   : > { %v761_v17 = vadd.f32 %v759_v11, %v754_v12  ;;  %v760_v19 = vadd.f32 %v759_v11, %v750_v13  ;;  %v672_v21 = vsel %vm623_vm2, %v670_v15, -inf  ;;  %v720_v28 = vsel %vm623_vm2, %v718_v22, -inf }
 0x255   : > { %724 = vmax.xlane.f32.xlu0 %v723_v20  ;;  %673 = vmax.xlane.f32.xlu1 %v672_v21 }
 0x256   : > { %v765_v23 = vmul.f32 0.2, %v761_v17  ;;  %v764_v24 = vmul.f32 0.2, %v760_v19  ;;  %vm763_vm7 = vcmp.ge.f32.partialorder %v761_v17, 0.0  ;;  %vm762_vm8 = vcmp.ge.f32.partialorder %v760_v19, 0.0 }
 0x258   : > { %v604_v26 = vpop.permute.xlu1 %603  ;;  %v609_v27 = vpop.permute.xlu0 %608  ;;  %v767_v29 = vsel %vm763_vm7, %v761_v17, %v765_v23  ;;  %v766_v33 = vsel %vm762_vm8, %v760_v19, %v764_v24 }
 0x259   : > { %v615_v30 = vadd.f32 %v614_v25, %v604_v26  ;;  %v616_v31 = vadd.f32 %v614_v25, %v609_v27  ;;  %721 = vmax.xlane.f32.xlu1 %v720_v28  ;;  %v771_v32 = vsel %vm623_vm2, %v767_v29, -inf  ;;  %v768_v36 = vsel %vm623_vm2, %v766_v33, -inf }
 0x25a   : > { %772 = vmax.xlane.f32.xlu0 %v771_v32 }
 0x25b   : > { %v619_v34 = vmul.f32 0.2, %v615_v30  ;;  %v620_v35 = vmul.f32 0.2, %v616_v31  ;;  %vm618_vm9 = vcmp.ge.f32.partialorder %v616_v31, 0.0  ;;  %vm617_vm10 = vcmp.ge.f32.partialorder %v615_v30, 0.0 }
 0x25d   : > { %769 = vmax.xlane.f32.xlu1 %v768_v36  ;;  %v1692_v37 = vsel %vm618_vm9, %v616_v31, %v620_v35  ;;  %v1694_v38 = vsel %vm617_vm10, %v615_v30, %v619_v34 }
 0x25e   : > { %v627_v39 = vsel %vm623_vm2, %v1692_v37, -inf  ;;  %v624_v41 = vsel %vm623_vm2, %v1694_v38, -inf }
 0x25f   : > { %628 = vmax.xlane.f32.xlu0 %v627_v39 }
 0x261   : > { %625 = vmax.xlane.f32.xlu1 %v624_v41 }
 0x272   : > { %1341 = vrot.lane.b32.xlu1 %v1678_v40, %s1495_s21 }
 0x2de   : > { %v677_v42 = vpop.xlane.xlu0 %676 }
 0x2df   : > { %v679_v43 = vsub.f32 %v671_v6, %v677_v42 }
 0x2e1   : > { %v682_v44 = vmul.f32 1.442695, %v679_v43 }
 0x2e2   : > { %v674_v45 = vpop.xlane.xlu1 %673  ;;  %v725_v46 = vpop.xlane.xlu0 %724 }
 0x2e3   : > { %1356 = vpow2.f32 %v682_v44  ;;  %v678_v47 = vsub.f32 %v670_v15, %v674_v45  ;;  %v727_v48 = vsub.f32 %v719_v10, %v725_v46 }
 0x2e5   : > { %v680_v49 = vmul.f32 1.442695, %v678_v47  ;;  %v730_v50 = vmul.f32 1.442695, %v727_v48 }
 0x2e6   : > { %v722_v51 = vpop.xlane.xlu1 %721 }
 0x2e7   : > { %1358 = vpow2.f32 %v680_v49  ;;  %v726_v52 = vsub.f32 %v718_v22, %v722_v51  ;;  %v773_v53 = vpop.xlane.xlu0 %772 }
 0x2e8   : > { %1360 = vpow2.f32 %v730_v50  ;;  %v775_v54 = vsub.f32 %v767_v29, %v773_v53 }
 0x2e9   : > { %v728_v55 = vmul.f32 1.442695, %v726_v52 }
 0x2ea   : > { %v778_v56 = vmul.f32 1.442695, %v775_v54  ;;  %v770_v57 = vpop.xlane.xlu1 %769 }
 0x2eb   : > { %1362 = vpow2.f32 %v728_v55  ;;  %v774_v59 = vsub.f32 %v766_v33, %v770_v57 }
 0x2ec   : > { %1364 = vpow2.f32 %v778_v56  ;;  %v629_v23 = vpop.xlane.xlu0 %628 }
 0x2ed   : > { %v1357_v60 = vpop.eup %1356  ;;  %v776_v61 = vmul.f32 1.442695, %v774_v59  ;;  %v631_v24 = vsub.f32 %v1692_v37, %v629_v23 }
 0x2ee   : > { %v626_v62 = vpop.xlane.xlu1 %625  ;;  %v1706_v63 = vmul.f32 %v1357_v60, %v600_v58 }
 0x2ef   : > { %1366 = vpow2.f32 %v776_v61  ;;  %v630_v25 = vsub.f32 %v1694_v38, %v626_v62  ;;  %v634_v26 = vmul.f32 1.442695, %v631_v24 }
 0x2f0   : > { %v689_v1 = vsel %vm623_vm2, %v1706_v63, 0.0 }
 0x2f1   : > { %v1359_v2 = vpop.eup %1358  ;;  %690 = vadd.xlane.f32.xlu0 %v689_v1  ;;  %v632_v27 = vmul.f32 1.442695, %v630_v25  ;;  %1368 = vpow2.f32 %v634_v26 }
 0x2f2   : > { %v1361_v3 = vpop.eup %1360  ;;  %v1342_v4 = vpop.permute.xlu1 %1341  ;;  %v1710_v5 = vmul.f32 %v1359_v2, %v599_v0 }
 0x2f3   : > { %v1344_v6 = vunpack.i.h.bf16 %v1342_v4  ;;  %v1343_v7 = vunpack.i.l.bf16 %v1342_v4  ;;  %v1712_v8 = vmul.f32 %v1361_v3, %v600_v58  ;;  %1370 = vpow2.f32 %v632_v27 }
 0x2f4   : > { %v686_v9 = vsel %vm623_vm2, %v1710_v5, 0.0 }
 0x2f5   : > { %v1363_v10 = vpop.eup %1362  ;;  %v1264_v11 = vpack.c.bf16 %v1344_v6, %v1343_v7  ;;  %687 = vadd.xlane.f32.xlu1 %v686_v9  ;;  %v737_v12 = vsel %vm623_vm2, %v1712_v8, 0.0 }
 0x2f6   : > { %v1365_v13 = vpop.eup %1364  ;;  %738 = vadd.xlane.f32.xlu0 %v737_v12  ;;  %v1718_v15 = vmul.f32 %v1363_v10, %v599_v0 }
 0x2f7   : > { %1265 = vmatprep.subr.bf16.mxu0 %v1264_v11  ;;  %v1720_v16 = vmul.f32 %v1365_v13, %v600_v58 }
 0x2f8   : > { %1267 = vmatpush3.bf16.msra.mxu0 %v1264_v11  ;;  %v734_v17 = vsel %vm623_vm2, %v1718_v15, 0.0 }
 0x2f9   : > { %v1367_v19 = vpop.eup %1366  ;;  %735 = vadd.xlane.f32.xlu1 %v734_v17  ;;  %v785_v20 = vsel %vm623_vm2, %v1720_v16, 0.0 }
 0x2fa   : > { %786 = vadd.xlane.f32.xlu0 %v785_v20  ;;  %v1726_v21 = vmul.f32 %v1367_v19, %v599_v0 }
 0x2fb   : > { %v1369_v28 = vpop.eup %1368 }
 0x2fc   : > { %v782_v22 = vsel %vm623_vm2, %v1726_v21, 0.0  ;;  %v1735_v30 = vmul.f32 %v1369_v28, %v600_v58 }
 0x2fd   : > { %783 = vadd.xlane.f32.xlu1 %v782_v22  ;;  %v1371_v29 = vpop.eup %1370 }
 0x2fe   : > { %v1737_v31 = vmul.f32 %v1371_v29, %v599_v0  ;;  %v641_v32 = vsel %vm623_vm2, %v1735_v30, 0.0 }
 0x30e   : > { %1351 = vrot.lane.b32.xlu1 %v1678_v40, %s1496_s13 }
 0x310   : > { %1346 = vrot.lane.b32.xlu0 %v1678_v40, %s1497_s25  ;;  %v638_v40 = vsel %vm623_vm2, %v1737_v31, 0.0  ;;  %s1500_s25 = smov [#allocation4]  }
 0x32f   : > { %642 = vadd.xlane.f32.xlu0 %v641_v32 }
 0x332   : > { %639 = vadd.xlane.f32.xlu1 %v638_v40 }
 0x37e   : > { %v691_v33 = vpop.xlane.xlu0 %690 }
 0x37f   : > { %vm693_vm11 = vcmp.eq.f32.partialorder %v691_v33, 0.0 }
 0x380   : > { %v695_v34 = vsel %vm693_vm11, 1.0, %v691_v33 }
 0x381   : > { %1372 = vrcp.f32 %v695_v34 }
 0x382   : > { %v688_v35 = vpop.xlane.xlu1 %687 }
 0x383   : > { %vm692_vm12 = vcmp.eq.f32.partialorder %v688_v35, 0.0  ;;  %v739_v36 = vpop.xlane.xlu0 %738 }
 0x384   : > { %v694_v37 = vsel %vm692_vm12, 1.0, %v688_v35  ;;  %vm741_vm13 = vcmp.eq.f32.partialorder %v739_v36, 0.0 }
 0x385   : > { %1374 = vrcp.f32 %v694_v37  ;;  %v743_v38 = vsel %vm741_vm13, 1.0, %v739_v36 }
 0x386   : > { %1376 = vrcp.f32 %v743_v38  ;;  %v736_v39 = vpop.xlane.xlu1 %735 }
 0x387   : > { %vm740_vm14 = vcmp.eq.f32.partialorder %v736_v39, 0.0  ;;  %v787_v41 = vpop.xlane.xlu0 %786 }
 0x388   : > { %v742_v42 = vsel %vm740_vm14, 1.0, %v736_v39  ;;  %vm789_vm15 = vcmp.eq.f32.partialorder %v787_v41, 0.0 }
 0x389   : > { %1378 = vrcp.f32 %v742_v42  ;;  %v791_v43 = vsel %vm789_vm15, 1.0, %v787_v41 }
 0x38a   : > { %1380 = vrcp.f32 %v791_v43  ;;  %v784_v44 = vpop.xlane.xlu1 %783 }
 0x38b   : > { %v1373_v45 = vpop.eup %1372  ;;  %vm788_vm1 = vcmp.eq.f32.partialorder %v784_v44, 0.0  ;;  %v1347_v46 = vpop.permute.xlu0 %1346 }
 0x38c   : > { %v790_v47 = vsel %vm788_vm1, 1.0, %v784_v44  ;;  %v1349_v48 = vunpack.i.h.bf16 %v1347_v46  ;;  %v1348_v49 = vunpack.i.l.bf16 %v1347_v46  ;;  %v699_v50 = vmul.f32 %v1373_v45, %v1706_v63 }
 0x38d   : > { %1382 = vrcp.f32 %v790_v47 }
 0x38e   : > { %v1268_v51 = vpack.c.bf16 %v1349_v48, %v1348_v49  ;;  %v1352_v52 = vpop.permute.xlu1 %1351  ;;  %800 = vrot.lane.b32.xlu0 %v699_v50, %s1498_s26 }
 0x38f   : > { %v1375_v53 = vpop.eup %1374  ;;  %v1354_v54 = vunpack.i.h.bf16 %v1352_v52  ;;  %v1353_v55 = vunpack.i.l.bf16 %v1352_v52 }
 0x390   : > { %v1377_v56 = vpop.eup %1376  ;;  %1269 = vmatprep.subr.bf16.mxu0 %v1268_v51  ;;  %v697_v57 = vmul.f32 %v1375_v53, %v1710_v5 }
 0x391   : > { %v1272_v58 = vpack.c.bf16 %v1354_v54, %v1353_v55  ;;  %1271 = vmatpush3.bf16.msra.mxu0 %v1268_v51  ;;  %v747_v59 = vmul.f32 %v1377_v56, %v1712_v8 }
 0x392   : > { %798 = vrot.lane.b32.xlu1 %v697_v57, %s1498_s26  ;;  %s1396_s26 = sshll.u32 %s1500_s25, 4  ;;  %s1397_s26 = int_to_ptr.vmem [resolvable:$false] %s1396_s26 }
 0x393   : > { %v1379_v60 = vpop.eup %1378  ;;  %808 = vrot.lane.b32.xlu0 %v747_v59, %s1496_s13  ;;  %1273 = vmatprep.subr.bf16.mxu0 %v1272_v58  ;;  %p1399_p0 = scmp.lt.s32.totalorder %s1771_s23, %s1397_s26 }
 0x394   : > { %v1381_v61 = vpop.eup %1380  ;;  %v745_v62 = vmul.f32 %v1379_v60, %v1718_v15 }
 0x395   : > { %1275 = vmatpush3.bf16.msra.mxu0 %v1272_v58  ;;  %v795_v63 = vmul.f32 %v1381_v61, %v1720_v16 }
 0x396   : > { %806 = vrot.lane.b32.xlu1 %v745_v62, %s1496_s13  ;;  %s1392_s13 = scalar_lea.vmem %s1771_s23, 256 }
 0x397   : > { %v1383_v0 = vpop.eup %1382  ;;  %816 = vrot.lane.b32.xlu0 %v795_v63, %s1499_s10  ;;  %p1393_p11 = scmp.ne.s32.totalorder %s1771_s23, %s1392_s13 }
 0x398   : > { %v793_v1 = vmul.f32 %v1383_v0, %v1726_v21 }
 0x399   : > { %p1394_p12 = pnand %p1393_p11, %p1587_p5 }
 0x39a   : > { %814 = vrot.lane.b32.xlu1 %v793_v1, %s1499_s10  ;;  %s1398_s10 = scalar_lea.vmem %s1397_s26, 512 }
 0x39b   : > { %p1395_p13 = pneg %p1394_p12  ;;  %p1400_p1 = scmp.lt.s32.totalorder %s1398_s10, %s1392_s13 }
 0x39d   : > { %p1401_p2 = por %p1400_p1, %p1399_p0 }
 0x39f   : > { %p1402_p3 = pnand %p1401_p2, %p1395_p13 }
 0x3bc   : > { %v643_v2 = vpop.xlane.xlu0 %642 }
 0x3bd   : > { %vm645_vm3 = vcmp.eq.f32.partialorder %v643_v2, 0.0 }
 0x3be   : > { %v647_v4 = vsel %vm645_vm3, 1.0, %v643_v2 }
 0x3bf   : > { %v640_v3 = vpop.xlane.xlu1 %639  ;;  %1384 = vrcp.f32 %v647_v4 }
 0x3c0   : > { %vm644_vm4 = vcmp.eq.f32.partialorder %v640_v3, 0.0 }
 0x3c1   : > { %v646_v5 = vsel %vm644_vm4, 1.0, %v640_v3 }
 0x3c2   : > { %1386 = vrcp.f32 %v646_v5 }
 0x3c9   : > { %v1385_v7 = vpop.eup %1384 }
 0x3ca   : > { %v651_v11 = vmul.f32 %v1385_v7, %v1735_v30 }
 0x3cc   : > { %v1387_v10 = vpop.eup %1386 }
 0x3cd   : > { %v649_v15 = vmul.f32 %v1387_v10, %v1737_v31 }
 0x400   : > { %v801_v6 = vpop.permute.xlu0 %800 }
 0x401   : > { %v821_v12 = vsel %vm623_vm2, %v651_v11, %v801_v6 }
 0x404   : > { %v799_v8 = vpop.permute.xlu1 %798 }
 0x405   : > { %v809_v9 = vpop.permute.xlu0 %808  ;;  %v820_v20 = vsel %vm623_vm2, %v649_v15, %v799_v8 }
 0x406   : > { %v823_v16 = vsel %vm366_vm0, %v821_v12, %v809_v9 }
 0x408   : > { %v807_v13 = vpop.permute.xlu1 %806 }
 0x409   : > { %v817_v17 = vpop.permute.xlu0 %816  ;;  %v822_v21 = vsel %vm366_vm0, %v820_v20, %v807_v13 }
 0x40a   : > { %v826_v19 = vsel %vm824_vm5, %v823_v16, %v817_v17 }
 0x40b   : > { %849 = vst.msk [vmem:[%s324_s18 + $0x8] sm:$0xff] %vm847_vm6, %v826_v19 }
 0x40c   : > { %v815_v22 = vpop.permute.xlu1 %814 }
 0x40d   : > { %v825_v23 = vsel %vm824_vm5, %v822_v21, %v815_v22 }
 0x40e   : > { %848 = vst.msk [vmem:[%s324_s18] sm:$0xff] %vm847_vm6, %v825_v23  ;;  %1214 = vmatprep.mubr.msk.f32.mxu0 %vm847_vm6, %v825_v23 }
 0x40f   : > { %1215 = vmatmul.mubr.msk.f32.vlgmr.msra.gmra.mrb[4].mxu0 %vm847_vm6, %v826_v19 }
 0x410   : > { %1405 = shalt.err (!%p1402_p3)
}
 0x411   : > { %s1406_s18 = scalar_lea.hbm %s1769_s22, 256  ;;  %s1410_s25 = scalar_lea.hbm %s1867_s8, 512 }
 0x412   : > { %p1407_p4 = scmp.ne.s32.totalorder %s1769_s22, %s1406_s18  ;;  %p1411_p9 = scmp.lt.u32.totalorder %s1769_s22, %s1867_s8 }
 0x413   : > { %p1412_p10 = scmp.lt.u32.totalorder %s1410_s25, %s1406_s18  ;;  %p1414_p12 = scmp.lt.u32.totalorder %s1406_s18, %s1769_s22 }
 0x414   : > { %p1408_p7 = pnand %p1407_p4, %p1587_p5 }
 0x415   : > { %p1413_p11 = por %p1412_p10, %p1411_p9 }
 0x416   : > { %p1409_p8 = pneg %p1408_p7 }
 0x417   : > { %p1415_p13 = por %p1414_p12, %p1413_p11 }
 0x419   : > { %p1416_p0 = pnand %p1415_p13, %p1409_p8 }
 0x41b   : > { %1419 = shalt.err (!%p1416_p0)
}
 0x41c   : > { %s1501_s13 = smov 128   ;;  %s1502_s10 = smov 8  }
 0x41d   : > { %1277 = dma.vmem_to_hbm [thread:$0]  (%p1587_p5), %s1771_s23, 256, %s1769_s22, %s945_s24, %s1501_s13, %s1501_s13, %s1502_s10  }
 0x41e   : > { %s317_s19 = scalar_lea.vmem [#allocation2], %s1084_s17  ;;  %s1871_s20 = sshll.u32 %s1570_s9, 8 }
 0x41f   : > { %s958_s18 = sshll.u32 %s317_s19, 4  ;;  %s1809_s22 = scalar_lea.hbm %s1866_s7, %s1871_s20  ;;  %s1811_s18 = int_to_ptr.vmem [resolvable:$true] %s958_s18 }
 0x420   : > { %s940_s23 = scalar_lea.sflag [#allocation3], %s1752_s12  ;;  %s1420_s17 = scalar_lea.vmem %s1811_s18, 256 }
 0x421   : > { %p1421_p1 = scmp.ne.s32.totalorder %s1811_s18, %s1420_s17  ;;  %s1503_s9 = smov [#allocation2]  }
 0x422   : > { %s1424_s24 = sshll.u32 %s1503_s9, 4  ;;  %s1425_s24 = int_to_ptr.vmem [resolvable:$false] %s1424_s24 }
 0x423   : > { %p1422_p2 = pnand %p1421_p1, %p1587_p5  ;;  %s1426_s26 = scalar_lea.vmem %s1425_s24, 512 }
 0x424   : > { %p1427_p4 = scmp.lt.s32.totalorder %s1811_s18, %s1425_s24  ;;  %p1428_p7 = scmp.lt.s32.totalorder %s1426_s26, %s1420_s17 }
 0x425   : > { %p1423_p3 = pneg %p1422_p2 }
 0x426   : > { %p1429_p8 = por %p1428_p7, %p1427_p4 }
 0x428   : > { %p1430_p9 = pnand %p1429_p8, %p1423_p3 }
 0x4e2   : > { %v1216_v24 = vpop.f32.mrb[4].mxu0 }
 0x4e3   : > { %v932_v25 = vmul.f32 0.25, %v1216_v24  ;;  %v922_v26 = vpop.f32.mrb[5].mxu0 }
 0x4e4   : > { %v931_v27 = vmul.f32 0.25, %v922_v26 }
 0x4e5   : > { %v934_v28 = vadd.f32 %v932_v25, %v1647_v18 }
 0x4e6   : > { %v933_v29 = vadd.f32 %v931_v27, %v1637_v14 }
 0x4e7   : > { %1388 = vtanh.f32 %v934_v28 }
 0x4e8   : > { %1390 = vtanh.f32 %v933_v29 }
 0x4f1   : > { %v1389_v30 = vpop.eup %1388 }
 0x4f2   : > { %v1391_v18 = vpop.eup %1390  ;;  %938 = vst.msk [vmem:[%s317_s19 + $0x8] sm:$0xff] %vm366_vm0, %v1389_v30 }
 0x4f3   : > { %937 = vst.msk [vmem:[%s317_s19] sm:$0xff] %vm366_vm0, %v1391_v18 }
 0x4f4   : > { %1433 = shalt.err (!%p1430_p9)
}
 0x4f5   : > { %s1434_s19 = scalar_lea.hbm %s1809_s22, 256  ;;  %s1438_s25 = scalar_lea.hbm %s1866_s7, 512 }
 0x4f6   : > { %p1435_p10 = scmp.ne.s32.totalorder %s1809_s22, %s1434_s19  ;;  %p1439_p13 = scmp.lt.u32.totalorder %s1809_s22, %s1866_s7 }
 0x4f7   : > { %p1440_p0 = scmp.lt.u32.totalorder %s1438_s25, %s1434_s19  ;;  %p1442_p2 = scmp.lt.u32.totalorder %s1434_s19, %s1809_s22 }
 0x4f8   : > { %p1436_p11 = pnand %p1435_p10, %p1587_p5 }
 0x4f9   : > { %p1441_p1 = por %p1440_p0, %p1439_p13 }
 0x4fa   : > { %p1437_p12 = pneg %p1436_p11 }
 0x4fb   : > { %p1443_p3 = por %p1442_p2, %p1441_p1 }
 0x4fd   : > { %p1444_p4 = pnand %p1443_p3, %p1437_p12 }
 0x4ff   : > { %1447 = shalt.err (!%p1444_p4)
}
 0x500   : > { %1276 = dma.vmem_to_hbm [thread:$0]  (%p1587_p5), %s1811_s18, 256, %s1809_s22, %s940_s23, %s1501_s13, %s1501_s13, %s1502_s10  }
 0x501 PF: > { %p1287_p7 = scmp.ge.s32.totalorder %s1486_s30, 2  ;;  %s989_s17 = sand.u32 1, %s1474_s27  }
 0x502   : > { %s990_s26 = scalar_lea.sflag [#allocation3], %s989_s17 }
 0x503   : > { %p1281_p8 = pnand %p1287_p7, %p1591_p6 }
 0x505   : > { %1465 = dma.done.wait (!%p1281_p8), %s990_s26, 256  }
 0x506   : > { %1467 = vsyncadd (!%p1281_p8), %s990_s26, 4294967040  ;;  %s999_s15 = scalar_lea.sflag [#allocation5], %s989_s17 }
 0x507   : > { %1469 = dma.done.wait (!%p1281_p8), %s999_s15, 256  }
 0x508   : > { %1471 = vsyncadd (!%p1281_p8), %s999_s15, 4294967040  ;;  %p22_p5 = scmp.ge.s32.totalorder %s1574_s11, 4   ;;  %s1872_s27 = smov %s1478_s28 }
 0x509   : > { %s1873_s28 = smov %s1482_s29  ;;  %s1874_s29 = smov %s1585_s14 }
 0x50a   : > { %s1875_s30 = smov %s1574_s11  ;;  %24 = sbr.rel (!%p22_p5) target bundleno = 5 (0x5), region = 103 }
 0x511   :  { %1004 = vsyncpa [#allocation3], 1 }
 0x512   :  { %1006 = vsyncpa [#allocation3 + $0x1], 1 }
 0x513   :  { %1007 = vsyncpa [#allocation5], 1 }
 0x514   :  { %1009 = vsyncpa [#allocation5 + $0x1], 1 }

</bundles_post_ra>
